<compile_context>
chip_gen: v6e
topology: v6e:2x2x1
jax: 0.10.0
libtpu: 0.0.40
codegen_flags: <defaults>
</compile_context>

<pallas_src>
import jax
import jax.numpy as jnp
from jax.experimental import pallas as pl
from jax.experimental.pallas import tpu as pltpu


def _round_up(x, m):
    return ((x + m - 1) // m) * m


def patch_embed_kernel(patches_ref, w_ref, add_ref, out_ref):
    # patches_ref: (TM, Kp)   w_ref: (Kp, Ep)   add_ref: (TM, Ep)   out_ref: (TM, Ep)
    acc = jnp.dot(patches_ref[...], w_ref[...],
                  preferred_element_type=jnp.float32)        # MXU, f32 accumulate
    out_ref[...] = (acc + add_ref[...].astype(jnp.float32)).astype(out_ref.dtype)


def patch_embedding_forward(x_nchw, conv_w, conv_b, cls_token, pos_emb,
                            patch_size, *, tile_m=None, compute_dtype=None):
    """x_nchw: [B, C, H, W]; conv_w: [E, C, P, P]; conv_b: [E];
    cls_token: [1, 1, E]; pos_emb: [1, N+1, E]. Returns [B, N+1, E]."""
    B, C, H, W = x_nchw.shape
    E = conv_w.shape[0]
    P = patch_size
    Hp, Wp = H // P, W // P
    N = Hp * Wp
    K = C * P * P
    out_dtype = x_nchw.dtype

    # --- glue: im2col (reshape/transpose only, no compute; runs in XLA) ---
    # TODO(synk): for mem-bound end-to-end cases this extra HBM pass could be
    # removed by fusing patch extraction into the kernel (grid over patch-row
    # tiles of the raw image); kept in XLA here for simplicity.
    patches = x_nchw.reshape(B, C, Hp, P, Wp, P)
    patches = patches.transpose(0, 2, 4, 1, 3, 5).reshape(B, N, K)

    # Conv weight [E, C, P, P] -> matmul weight [K, E] (feature order matches im2col).
    w_mat = conv_w.reshape(E, K).T

    # Hoisted batch-invariant additive terms.
    pos = pos_emb.reshape(N + 1, E)
    add_rest = pos[1:, :] + conv_b.reshape(1, E)      # (N, E): bias + pos, patch rows
    row0 = cls_token.reshape(1, E) + pos[:1, :]       # (1, E): cls row

    # --- tiling / padding for MXU + lane/sublane alignment ---
    LANE = 128
    K_pad = _round_up(K, LANE)
    E_pad = _round_up(E, LANE)
    if tile_m is None:
        tile_m = min(128, _round_up(N, 8))            # 128 is the MXU granule on all gens
    N_pad = _round_up(N, tile_m)
    M = B * N_pad
    n_tiles_per_image = N_pad // tile_m
    num_m_tiles = M // tile_m

    if compute_dtype is None:
        compute_dtype = out_dtype                     # f32-in / f32-acc by default
    patches_p = jnp.pad(
        patches, ((0, 0), (0, N_pad - N), (0, K_pad - K))
    ).reshape(M, K_pad).astype(compute_dtype)
    w_p = jnp.pad(w_mat, ((0, K_pad - K), (0, E_pad - E))).astype(compute_dtype)
    add_p = jnp.pad(add_rest, ((0, N_pad - N), (0, E_pad - E))).astype(jnp.float32)

    itemsize = jnp.dtype(compute_dtype).itemsize
    cost = pl.CostEstimate(
        flops=2 * M * K_pad * E_pad,
        transcendentals=0,
        bytes_accessed=(M * K_pad + K_pad * E_pad) * itemsize
        + M * E_pad * (4 + jnp.dtype(out_dtype).itemsize),
    )

    if n_tiles_per_image == 1:
        add_index_map = lambda i: (0, 0)              # resident across all steps
    else:
        add_index_map = lambda i: (i % n_tiles_per_image, 0)

    proj = pl.pallas_call(
        patch_embed_kernel,
        out_shape=jax.ShapeDtypeStruct((M, E_pad), out_dtype),
        grid_spec=pltpu.PrefetchScalarGridSpec(
            num_scalar_prefetch=0,
            grid=(num_m_tiles,),
            in_specs=[
                # patches: one lane-dense M tile per step
                pl.BlockSpec((tile_m, K_pad), lambda i: (i, 0)),
                # weight: constant block index -> stays resident in VMEM
                pl.BlockSpec((K_pad, E_pad), lambda i: (0, 0)),
                # bias + positional embeddings for this patch tile
                pl.BlockSpec((tile_m, E_pad), add_index_map),
            ],
            out_specs=pl.BlockSpec((tile_m, E_pad), lambda i: (i, 0)),
        ),
        compiler_params=pltpu.CompilerParams(
            dimension_semantics=("parallel",)),
        cost_estimate=cost,
    )(patches_p, w_p, add_p)

    # Drop padding, splice in the cls row (batch-invariant, computed above).
    # TODO(synk): training-mode dropout (mask + 1/(1-p) scaling) not implemented;
    # dropout is identity in eval mode / p=0.
    proj = proj.reshape(B, N_pad, E_pad)[:, :N, :E].astype(out_dtype)
    row0 = jnp.broadcast_to(row0.astype(out_dtype).reshape(1, 1, E), (B, 1, E))
    return jnp.concatenate([row0, proj], axis=1)


if __name__ == "__main__":
    # Small shapes consistent with the module.
    B, C, H, W = 2, 4, 16, 16
    patch_size = 4
    embed_dim = 32
    num_patches = (H // patch_size) * (W // patch_size)   # 16
    dropout = 0.0

    key = jax.random.PRNGKey(0)
    k_x, k_w, k_b, k_cls, k_pos = jax.random.split(key, 5)

    x = jax.random.normal(k_x, (B, C, H, W), dtype=jnp.float32)
    conv_w = jax.random.normal(
        k_w, (embed_dim, C, patch_size, patch_size), dtype=jnp.float32) * 0.05
    conv_b = jax.random.normal(k_b, (embed_dim,), dtype=jnp.float32) * 0.05
    cls_token = jax.random.normal(k_cls, (1, 1, embed_dim), dtype=jnp.float32)
    pos_emb = jax.random.normal(
        k_pos, (1, num_patches + 1, embed_dim), dtype=jnp.float32)

    out = patch_embedding_forward(x, conv_w, conv_b, cls_token, pos_emb, patch_size)
    out = jax.block_until_ready(out)

    # Pure-JAX reference (same math) to sanity-check the kernel.
    Hp, Wp = H // patch_size, W // patch_size
    patches_ref = x.reshape(B, C, Hp, patch_size, Wp, patch_size)
    patches_ref = patches_ref.transpose(0, 2, 4, 1, 3, 5).reshape(
        B, num_patches, C * patch_size * patch_size)
    proj_ref = patches_ref @ conv_w.reshape(embed_dim, -1).T + conv_b
    ref = jnp.concatenate(
        [jnp.broadcast_to(cls_token, (B, 1, embed_dim)), proj_ref], axis=1) + pos_emb

    assert out.shape == (B, num_patches + 1, embed_dim), out.shape
    assert jnp.allclose(out, ref, atol=1e-4, rtol=1e-4), float(
        jnp.max(jnp.abs(out - ref)))
    print("KERNEL_OK")
</pallas_src>

<mosaic_0001>
module attributes {stable_mosaic.version = 11 : i64} {
  func.func @patch_embed_kernel(%arg0: i32, %arg1: memref<16x128xf32, #tpu.memory_space<vmem>>, %arg2: memref<128x128xf32, #tpu.memory_space<vmem>>, %arg3: memref<16x128xf32, #tpu.memory_space<vmem>>, %arg4: memref<16x128xf32, #tpu.memory_space<vmem>>) attributes {dimension_semantics = [#tpu.dimension_semantics<parallel>], iteration_bounds = array<i64: 2>, scalar_prefetch = 0 : i64, scratch_operands = 0 : i64, tpu.core_type = #tpu.core_type<tc>, window_params = [{transform_indices = @transform_0, window_bounds = array<i64: 16, 128>}, {pipeline_mode = #tpu.pipeline_mode<synchronous>, transform_indices = @transform_1, window_bounds = array<i64: 128, 128>}, {pipeline_mode = #tpu.pipeline_mode<synchronous>, transform_indices = @transform_2, window_bounds = array<i64: 16, 128>}, {transform_indices = @transform_3, window_bounds = array<i64: 16, 128>}]} {
    %c0 = arith.constant 0 : index
    %c0_0 = arith.constant 0 : index
    %0 = vector.load %arg1[%c0, %c0_0] : memref<16x128xf32, #tpu.memory_space<vmem>>, vector<16x128xf32>
    %c0_1 = arith.constant 0 : index
    %c0_2 = arith.constant 0 : index
    %1 = vector.load %arg2[%c0_1, %c0_2] : memref<128x128xf32, #tpu.memory_space<vmem>>, vector<128x128xf32>
    %cst = arith.constant dense<0.000000e+00> : vector<16x128xf32>
    %2 = tpu.matmul %0, %1, %cst {dimension_numbers = #tpu.dot_dimension_numbers<[1], [0], [0], [1], [0, 0, 1, 1], [], []>} : vector<16x128xf32>, vector<128x128xf32>, vector<16x128xf32> -> vector<16x128xf32>
    %c0_3 = arith.constant 0 : index
    %c0_4 = arith.constant 0 : index
    %3 = vector.load %arg3[%c0_3, %c0_4] : memref<16x128xf32, #tpu.memory_space<vmem>>, vector<16x128xf32>
    %4 = arith.addf %2, %3 : vector<16x128xf32>
    %c0_5 = arith.constant 0 : index
    %c0_6 = arith.constant 0 : index
    %5 = vector.load %arg4[%c0_5, %c0_6] : memref<16x128xf32, #tpu.memory_space<vmem>>, vector<16x128xf32>
    tpu.vector_store %arg4[%c0_5, %c0_6], %4 {strides = array<i32>} : memref<16x128xf32, #tpu.memory_space<vmem>>, vector<16x128xf32>,
    return
  }
  func.func @transform_0(%arg0: i32) -> (i32, i32) {
    %c0_i32 = arith.constant 0 : i32
    %c0_i32_0 = arith.constant 0 : i32
    return %arg0, %c0_i32 : i32, i32
  }
  func.func @transform_1(%arg0: i32) -> (i32, i32) {
    %c0_i32 = arith.constant 0 : i32
    %c0_i32_0 = arith.constant 0 : i32
    %c0_i32_1 = arith.constant 0 : i32
    return %c0_i32, %c0_i32_0 : i32, i32
  }
  func.func @transform_2(%arg0: i32) -> (i32, i32) {
    %c0_i32 = arith.constant 0 : i32
    %c0_i32_0 = arith.constant 0 : i32
    %c0_i32_1 = arith.constant 0 : i32
    return %c0_i32, %c0_i32_0 : i32, i32
  }
  func.func @transform_3(%arg0: i32) -> (i32, i32) {
    %c0_i32 = arith.constant 0 : i32
    %c0_i32_0 = arith.constant 0 : i32
    return %arg0, %c0_i32 : i32, i32
  }
}

</mosaic_0001>

<bundles_post_ra>
// kernel: tpu_custom_call.1
= control target key start
LH: loop header
LB: loop body
LE: loop exit
PB: predicated region body
PF: predicated region fallthrough
CT: control target
= control target key end

     0   :  { %8 = vsyncpa [#allocation3], 0  ;;  %s950_s0 = inlined_call_operand.hbm [shape: f32[32,128], index: 0, kind: input, shape index: {}]   ;;  %s951_s1 = inlined_call_operand.hbm [shape: f32[128,128], index: 1, kind: input, shape index: {}]   ;;  %s952_s2 = inlined_call_operand.hbm [shape: f32[16,128], index: 2, kind: input, shape index: {}]   ;;  %s953_s3 = inlined_call_operand.hbm [shape: f32[32,128], index: 3, kind: output, shape index: {}]  }
   0x1   :  { %10 = vsyncpa [#allocation3 + $0x1], 0 }
   0x2   :  { %11 = vsyncpa [#allocation6], 0 }
   0x3   :  { %12 = vsyncpa [#allocation4], 0 }
   0x4   :  { %14 = vsyncpa [#allocation4 + $0x1], 0  ;;  %s745_s12 = smov 0   ;;  %s747_s13 = smov 0  }
   0x5   :  { %s749_s14 = smov 0   ;;  %s751_s15 = smov 0  }
   0x6 LB: > { %s766_s16 = sadd.s32 4294967295, %s715_s15   ;;  %s423_s17 = sadd.s32 4294967294, %s715_s15   ;;  %s715_s15 = sphi %s751_s15, %s974_s15   ;;  %s711_s14 = sphi %s749_s14, %s973_s14   ;;  %s707_s13 = sphi %s747_s13, %s972_s13   ;;  %s703_s12 = sphi %s745_s12, %s971_s12  }
   0x7   : > { %p40_p0 = scmp.ne.s32.totalorder %s707_s13, %s703_s12  ;;  %p954_p1 = scmp.eq.s32.totalorder %s766_s16, 0 }
   0x8   : > { %p106_p2 = scmp.eq.s32.totalorder %s766_s16, 1  ;;  %p112_p3 = scmp.eq.s32.totalorder %s423_s17, 1 }
   0x9   : > { %p775_p4 = por %p954_p1, %p40_p0  ;;  %p424_p5 = scmp.ge.s32.totalorder %s715_s15, 1 }
   0xa   : > { %p780_p6 = por %p112_p3, %p40_p0  ;;  %p119_p7 = scmp.lt.s32.totalorder %s715_s15, 3 }
   0xb   : > { %s958_s18 = scalar_select %p775_p4, 1, 0 }
   0xc   : > { %s959_s19 = scalar_select %p780_p6, 1, 0 }
   0xd   : > { %p785_p8 = pnand %p424_p5, %p119_p7  ;;  %s717_s21 = smov [#allocation5]  }
   0xe   : > { %s131_s22 = sshll.u32 %s717_s21, 4  ;;  %s718_s24 = smov [#allocation7]   ;;  %s132_s22 = int_to_ptr.vmem [resolvable:$true] %s131_s22 }
   0xf   : > { %s960_s20 = scalar_select %p785_p8, 1, 0 }
  0x10   : > { %p508_p9 = pneg %p785_p8  ;;  %s144_s25 = sshll.u32 %s718_s24, 4  ;;  %s145_s25 = int_to_ptr.vmem [resolvable:$true] %s144_s25 }
  0x11   : > { %s578_s26 = scalar_lea.vmem %s132_s22, 2048  ;;  %p586_p5 = scmp.lt.s32.totalorder %s132_s22, %s132_s22 }
  0x12   : > { %p794_p11 = pnand %p508_p9, %p954_p1  ;;  %p579_p13 = scmp.ne.s32.totalorder %s132_s22, %s578_s26 }
  0x13   : > { %p587_p7 = scmp.lt.s32.totalorder %s578_s26, %s578_s26 }
  0x14   : > { %p569_p12 = pneg %p794_p11 }
  0x15   : > { %p588_p10 = por %p587_p7, %p586_p5 }
  0x16   : > { %p581_p0 = pnand %p579_p13, %p569_p12 }
  0x18   : > { %p582_p3 = pneg %p581_p0 }
  0x1a   : > { %p589_p9 = pnand %p588_p10, %p582_p3 }
  0x1c   : > { %592 = shalt.err (!%p589_p9)
}
  0x1d   : > { %s719_s27 = smov 128   ;;  %s720_s28 = smov 8  }
  0x1e   : > { %511 = dma.hbm_to_vmem [thread:$0]  (!%p794_p11), %s951_s1, 2048, %s132_s22, [#allocation6], %s719_s27, %s719_s27, %s720_s28  }
  0x1f   : > { %s604_s4 = scalar_lea.vmem %s145_s25, 256  ;;  %p612_p10 = scmp.lt.s32.totalorder %s145_s25, %s145_s25 }
  0x20   : > { %p605_p13 = scmp.ne.s32.totalorder %s145_s25, %s604_s4  ;;  %p613_p3 = scmp.lt.s32.totalorder %s604_s4, %s604_s4 }
  0x22   : > { %p607_p0 = pnand %p605_p13, %p569_p12  ;;  %p614_p7 = por %p613_p3, %p612_p10 }
  0x24   : > { %p608_p5 = pneg %p607_p0 }
  0x26   : > { %p615_p9 = pnand %p614_p7, %p608_p5 }
  0x28   : > { %618 = shalt.err (!%p615_p9)
}
  0x29   : > { %514 = dma.hbm_to_vmem [thread:$0]  (!%p794_p11), %s952_s2, 256, %s145_s25, [#allocation6], %s719_s27, %s719_s27, %s720_s28  }
  0x2a   : > { %s823_s7 = sadd.s32 1, %s715_s15   ;;  %s27_s8 = sadd.s32 1, %s711_s14 }
  0x2b   : > { %s24_s9 = ssub.s32 %s715_s15, %s823_s7  ;;  %p34_p12 = scmp.ne.s32.totalorder %s711_s14, %s707_s13 }
  0x2c   : > { %p25_p13 = scmp.eq.s32.totalorder %s24_s9, 0  ;;  %p35_p0 = scmp.eq.s32.totalorder %s715_s15, 0 }
  0x2d   : > { %p833_p5 = por %p106_p2, %p34_p12  ;;  %p525_p10 = scmp.lt.s32.totalorder %s715_s15, 2 }
  0x2e   : > { %s839_s11 = scalar_select %p25_p13, %s711_s14, %s27_s8  }
  0x2f   : > { %s962_s10 = scalar_select %p833_p5, 1, 0 }
  0x30   : > { %p36_p3 = por %p35_p0, %p34_p12  ;;  %s158_s17 = sand.u32 1, %s711_s14  }
  0x31   : > { %s428_s21 = sshll.u32 %s158_s17, 4  ;;  %s441_s22 = sshll.u32 %s715_s15, 8 }
  0x32   : > { %s846_s25 = scalar_lea.hbm %s950_s0, %s441_s22  ;;  %s162_s26 = scalar_lea.vmem [#allocation2], %s428_s21 }
  0x33   : > { %s169_s29 = sshll.u32 %s162_s26, 4  ;;  %p850_p2 = pnand %p525_p10, %p36_p3  ;;  %s848_s29 = int_to_ptr.vmem [resolvable:$true] %s169_s29 }
  0x34   : > { %s854_s4 = scalar_lea.sflag [#allocation3], %s158_s17  ;;  %s619_s5 = scalar_lea.hbm %s846_s25, 256 }
  0x35   : > { %p620_p11 = scmp.ne.s32.totalorder %s846_s25, %s619_s5  ;;  %p621_p7 = pneg %p850_p2 }
  0x36   : > { %s624_s9 = scalar_lea.hbm %s950_s0, 512  ;;  %p625_p13 = scmp.lt.s32.totalorder %s846_s25, %s950_s0 }
  0x37   : > { %p622_p9 = pnand %p621_p7, %p620_p11  ;;  %p626_p0 = scmp.lt.s32.totalorder %s624_s9, %s619_s5 }
  0x39   : > { %p623_p12 = pneg %p622_p9  ;;  %p627_p10 = por %p626_p0, %p625_p13 }
  0x3b   : > { %p628_p3 = pnand %p627_p10, %p623_p12 }
  0x3d   : > { %631 = shalt.err (!%p628_p3)
}
  0x3e   : > { %s632_s17 = scalar_lea.vmem %s848_s29, 256  ;;  %s721_s23 = smov [#allocation2]  }
  0x3f   : > { %p633_p1 = scmp.ne.s32.totalorder %s848_s29, %s632_s17  ;;  %s637_s24 = sshll.u32 %s721_s23, 4  ;;  %s638_s24 = int_to_ptr.vmem [resolvable:$false] %s637_s24 }
  0x40   : > { %s639_s26 = scalar_lea.vmem %s638_s24, 512  ;;  %p640_p9 = scmp.lt.s32.totalorder %s848_s29, %s638_s24 }
  0x41   : > { %p635_p6 = pnand %p633_p1, %p621_p7  ;;  %p641_p5 = scmp.lt.s32.totalorder %s639_s26, %s632_s17 }
  0x43   : > { %p636_p11 = pneg %p635_p6  ;;  %p642_p4 = por %p641_p5, %p640_p9 }
  0x45   : > { %p643_p8 = pnand %p642_p4, %p636_p11 }
  0x47   : > { %646 = shalt.err (!%p643_p8)
}
  0x48   : > { %518 = dma.hbm_to_vmem [thread:$0]  (!%p850_p2), %s846_s25, 256, %s848_s29, %s854_s4, %s719_s27, %s719_s27, %s720_s28  }
  0x49   : > { %p964_p1 = scmp.ne.s32.totalorder %s960_s20, 0 }
  0x4a   : > { %s881_s5 = sand.u32 (!%p964_p1), 1, %s707_s13   ;;  %p965_p4 = scmp.ne.s32.totalorder (!%p964_p1), %s958_s18, 0 }
  0x4b   : > { %181 = sbr.rel (%p964_p1) target bundleno = 328 (0x148), region = 32  ;;  %s432_s6 = sshll.u32 (!%p964_p1), %s881_s5, 4 }
  0x4c   : > { %s184_s8 = scalar_lea.sflag (!%p964_p1), [#allocation3], %s881_s5  ;;  %s887_s30 = scalar_lea.vmem (!%p964_p1), [#allocation2], %s432_s6 }
  0x50   : > { %690 = dma.done.wait (%p965_p4), %s184_s8, 256  }
  0x51   : > { %692 = vsyncadd (%p965_p4), %s184_s8, 4294967040  ;;  %p966_p6 = scmp.eq.s32.totalorder %s766_s16, 0 }
  0x53   : > { %694 = dma.done.wait (%p966_p6), [#allocation6], 2304   ;;  %p967_p8 = pmov %p966_p6 }
  0x54   : > { %v237_v0 = vld [vmem:[#allocation5 + $0x78] sm:$0xff]  ;;  %v236_v1 = vld [vmem:[#allocation5 + $0x70] sm:$0xff]  ;;  %v235_v2 = vld [vmem:[#allocation5 + $0x68] sm:$0xff]  ;;  %s217_s18 = scalar_lea.vmem [#allocation8], %s432_s6  ;;  %s442_s27 = sshll.u32 %s766_s16, 8 }
  0x55   : > { %696 = vsyncadd (%p967_p8), [#allocation6], 4294964992  ;;  %461 = vmatprep.subr.mxu0 %v237_v0  ;;  %v234_v3 = vld [vmem:[#allocation5 + $0x60] sm:$0xff]  ;;  %v233_v5 = vld [vmem:[#allocation5 + $0x58] sm:$0xff]  ;;  %s331_s20 = sshll.u32 %s217_s18, 4  ;;  %s907_s29 = scalar_lea.hbm %s953_s3, %s442_s27  ;;  %s902_s20 = int_to_ptr.vmem [resolvable:$true] %s331_s20 }
  0x56   : > { %462 = vmatpush3.msra.mxu0 %v237_v0  ;;  %v220_v4 = vld [vmem:[%s887_s30] sm:$0xff]  ;;  %v231_v7 = vld [vmem:[#allocation5 + $0x48] sm:$0xff]  ;;  %v229_v9 = vld [vmem:[#allocation5 + $0x38] sm:$0xff]  ;;  %s318_s4 = scalar_lea.sflag [#allocation4], %s881_s5  ;;  %s647_s9 = scalar_lea.vmem %s902_s20, 256 }
  0x57   : > { %463 = vmatprep.subr.mxu0 %v236_v1  ;;  %493 = vmatprep.mubr.f32.mxu0 %v220_v4  ;;  %v232_v6 = vld [vmem:[#allocation5 + $0x50] sm:$0xff]  ;;  %v230_v8 = vld [vmem:[#allocation5 + $0x40] sm:$0xff]  ;;  %v227_v11 = vld [vmem:[#allocation5 + $0x28] sm:$0xff]  ;;  %p648_p5 = scmp.ne.s32.totalorder %s902_s20, %s647_s9  ;;  %p968_p2 = scmp.ne.s32.totalorder %s962_s10, 0 }
  0x58   : > { %464 = vmatpush3.msra.mxu0 %v236_v1  ;;  %v228_v10 = vld [vmem:[#allocation5 + $0x30] sm:$0xff]  ;;  %v226_v12 = vld [vmem:[#allocation5 + $0x20] sm:$0xff]  ;;  %v225_v13 = vld [vmem:[#allocation5 + $0x18] sm:$0xff]  ;;  %s722_s16 = smov [#allocation8]  }
  0x59   : > { %465 = vmatprep.subr.mxu0 %v235_v2  ;;  %v224_v14 = vld [vmem:[#allocation5 + $0x10] sm:$0xff]  ;;  %v223_v15 = vld [vmem:[#allocation5 + $0x8] sm:$0xff]  ;;  %v222_v16 = vld [vmem:[#allocation5] sm:$0xff]  ;;  %p649_p7 = pnand %p648_p5, %p968_p2  ;;  %s651_s21 = sshll.u32 %s722_s16, 4  ;;  %s652_s21 = int_to_ptr.vmem [resolvable:$false] %s651_s21 }
  0x5a   : > { %466 = vmatpush3.msra.mxu0 %v235_v2  ;;  %v221_v17 = vld [vmem:[%s887_s30 + $0x8] sm:$0xff]  ;;  %v238_v20 = vld [vmem:[#allocation7] sm:$0xff]  ;;  %s653_s22 = scalar_lea.vmem %s652_s21, 512  ;;  %p654_p13 = scmp.lt.s32.totalorder %s902_s20, %s652_s21 }
  0x5b   : > { %467 = vmatprep.subr.mxu0 %v234_v3  ;;  %v239_v18 = vld [vmem:[#allocation7 + $0x8] sm:$0xff]  ;;  %p650_p12 = pneg %p649_p7  ;;  %p655_p0 = scmp.lt.s32.totalorder %s653_s22, %s647_s9 }
  0x5c   : > { %468 = vmatpush3.msra.mxu0 %v234_v3 }
  0x5d   : > { %469 = vmatprep.subr.mxu0 %v233_v5  ;;  %p656_p10 = por %p655_p0, %p654_p13 }
  0x5e   : > { %470 = vmatpush3.msra.mxu0 %v233_v5 }
  0x5f   : > { %471 = vmatprep.subr.mxu0 %v232_v6  ;;  %p657_p3 = pnand %p656_p10, %p650_p12 }
  0x60   : > { %472 = vmatpush3.msra.mxu0 %v232_v6 }
  0x61   : > { %473 = vmatprep.subr.mxu0 %v231_v7 }
  0x62   : > { %474 = vmatpush3.msra.mxu0 %v231_v7 }
  0x63   : > { %475 = vmatprep.subr.mxu0 %v230_v8 }
  0x64   : > { %476 = vmatpush3.msra.mxu0 %v230_v8 }
  0x65   : > { %477 = vmatprep.subr.mxu0 %v229_v9 }
  0x66   : > { %478 = vmatpush3.msra.mxu0 %v229_v9 }
  0x67   : > { %479 = vmatprep.subr.mxu0 %v228_v10 }
  0x68   : > { %480 = vmatpush3.msra.mxu0 %v228_v10 }
  0x69   : > { %481 = vmatprep.subr.mxu0 %v227_v11 }
  0x6a   : > { %482 = vmatpush3.msra.mxu0 %v227_v11 }
  0x6b   : > { %483 = vmatprep.subr.mxu0 %v226_v12 }
  0x6c   : > { %484 = vmatpush3.msra.mxu0 %v226_v12 }
  0x6d   : > { %485 = vmatprep.subr.mxu0 %v225_v13 }
  0x6e   : > { %486 = vmatpush3.msra.mxu0 %v225_v13 }
  0x6f   : > { %487 = vmatprep.subr.mxu0 %v224_v14 }
  0x70   : > { %488 = vmatpush3.msra.mxu0 %v224_v14 }
  0x71   : > { %489 = vmatprep.subr.mxu0 %v223_v15 }
  0x72   : > { %490 = vmatpush3.msra.mxu0 %v223_v15 }
  0x73   : > { %491 = vmatprep.subr.mxu0 %v222_v16 }
  0x74   : > { %492 = vmatpush3.msra.mxu0 %v222_v16 }
  0x75   : > { %494 = vmatmul.mubr.f32.vlgmr.msra.gmra.mxu0 %v221_v17 }
 0x135   : > { %v495_v19 = vpop.f32.mrf.mxu0 }
 0x136   : > { %v312_v21 = vadd.f32 %v495_v19, %v239_v18 }
 0x137   : > { %v306_v22 = vpop.f32.mrf.mxu0 }
 0x138   : > { %316 = vst [vmem:[%s217_s18 + $0x8] sm:$0xff] %v312_v21  ;;  %v307_v23 = vadd.f32 %v306_v22, %v238_v20 }
 0x13a   : > { %315 = vst [vmem:[%s217_s18] sm:$0xff] %v307_v23 }
 0x13b   : > { %660 = shalt.err (!%p657_p3)
}
 0x13c   : > { %s661_s17 = scalar_lea.hbm %s907_s29, 256  ;;  %s665_s26 = scalar_lea.hbm %s953_s3, 512 }
 0x13d   : > { %p662_p11 = scmp.ne.s32.totalorder %s907_s29, %s661_s17  ;;  %p666_p4 = scmp.lt.s32.totalorder %s907_s29, %s953_s3 }
 0x13e   : > { %p667_p6 = scmp.lt.s32.totalorder %s665_s26, %s661_s17 }
 0x13f   : > { %p663_p9 = pnand %p662_p11, %p968_p2 }
 0x140   : > { %p668_p8 = por %p667_p6, %p666_p4 }
 0x141   : > { %p664_p1 = pneg %p663_p9 }
 0x143   : > { %p669_p5 = pnand %p668_p8, %p664_p1 }
 0x145   : > { %672 = shalt.err (!%p669_p5)
}
 0x146   : > { %s723_s30 = smov 128   ;;  %s724_s18 = smov 8  }
 0x147   : > { %506 = dma.vmem_to_hbm [thread:$0]  (%p968_p2), %s902_s20, 256, %s907_s29, %s318_s4, %s723_s30, %s723_s30, %s724_s18  }
 0x148 PF: > { %s346_s27 = sand.u32 1, %s703_s12   ;;  %p969_p7 = scmp.ne.s32.totalorder %s959_s19, 0 }
 0x149   : > { %p970_p12 = scmp.ge.s32.totalorder %s715_s15, 2  ;;  %s347_s28 = scalar_lea.sflag [#allocation4], %s346_s27 }
 0x14b   : > { %p520_p13 = pnand %p970_p12, %p969_p7 }
 0x14d   : > { %p521_p0 = pneg %p520_p13 }
 0x14f   : > { %698 = dma.done.wait (%p521_p0), %s347_s28, 256  }
 0x150   : > { %700 = vsyncadd (%p521_p0), %s347_s28, 4294967040  ;;  %p17_p10 = scmp.ge.s32.totalorder %s823_s7, 4   ;;  %s971_s12 = smov %s707_s13 }
 0x151   : > { %s972_s13 = smov %s711_s14  ;;  %s973_s14 = smov %s839_s11 }
 0x152   : > { %s974_s15 = smov %s823_s7  ;;  %19 = sbr.rel (!%p17_p10) target bundleno = 6 (0x6), region = 85 }
 0x157   :  { %352 = vsyncpa [#allocation3], 1 }
 0x158   :  { %354 = vsyncpa [#allocation3 + $0x1], 1 }
 0x159   :  { %355 = vsyncpa [#allocation6], 1 }
 0x15a   :  { %356 = vsyncpa [#allocation4], 1 }
 0x15b   :  { %358 = vsyncpa [#allocation4 + $0x1], 1 }

</bundles_post_ra>
